<compile_context>
chip_gen: v7x
topology: tpu7x:2x2x1
jax: 0.10.0
libtpu: 0.0.40
codegen_flags: <defaults>
</compile_context>

<pallas_src>
import functools

import jax
import jax.numpy as jnp
from jax.experimental import pallas as pl
from jax.experimental.pallas import tpu as pltpu


def _round_up(x, m):
    return ((x + m - 1) // m) * m


def decoder_kernel(x_ref, w1_ref, b1_ref, w2_ref, b2_ref, w3_ref, b3_ref,
                   out_ref):
    # Layer 1: relu(x @ W1 + b1)   (bf16 matmul, f32 accumulate / bias / relu)
    h1 = jnp.dot(x_ref[...], w1_ref[...], preferred_element_type=jnp.float32)
    h1 = jnp.maximum(h1 + b1_ref[...], 0.0)
    # Layer 2: relu(h1 @ W2 + b2)
    h2 = jnp.dot(h1.astype(w2_ref.dtype), w2_ref[...],
                 preferred_element_type=jnp.float32)
    h2 = jnp.maximum(h2 + b2_ref[...], 0.0)
    # Layer 3: relu(h2 @ W3 + b3)
    h3 = jnp.dot(h2.astype(w3_ref.dtype), w3_ref[...],
                 preferred_element_type=jnp.float32)
    out_ref[...] = jnp.maximum(h3 + b3_ref[...], 0.0).astype(out_ref.dtype)


@functools.partial(jax.jit, static_argnames=())
def decoder_forward(x, params):
    """x: [B, D_in] float32. params: dict with w1,b1,w2,b2,w3,b3.
    Weights are [in, out]; biases are [1, out] (2-D for TPU layout)."""
    w1, b1 = params["w1"], params["b1"]
    w2, b2 = params["w2"], params["b2"]
    w3, b3 = params["w3"], params["b3"]

    B, D_in = x.shape
    H1, H2, D_out = w1.shape[1], w2.shape[1], w3.shape[1]

    # Pad feature dims to lane multiples (128); batch to sublane multiples (8).
    Din_p, H1_p = _round_up(D_in, 128), _round_up(H1, 128)
    H2_p, Dout_p = _round_up(H2, 128), _round_up(D_out, 128)

    # Large batch tiles amortize per-step overhead; keep small batches whole.
    TILE_B = 512 if B >= 512 else _round_up(B, 8)
    B_pad = _round_up(B, TILE_B)
    n_tiles = B_pad // TILE_B

    f32, bf16 = jnp.float32, jnp.bfloat16

    def pad2(a, r, c, dtype):
        return jnp.pad(a.astype(f32), ((0, r - a.shape[0]), (0, c - a.shape[1]))
                       ).astype(dtype)

    # Zero padding is semantics-preserving: padded hidden units see zero
    # weights + zero bias -> relu(0) = 0, and contribute zero downstream.
    x_p = pad2(x, B_pad, Din_p, bf16)
    w1_p = pad2(w1, Din_p, H1_p, bf16)
    w2_p = pad2(w2, H1_p, H2_p, bf16)
    w3_p = pad2(w3, H2_p, Dout_p, bf16)
    b1_p = pad2(b1, 1, H1_p, f32)
    b2_p = pad2(b2, 1, H2_p, f32)
    b3_p = pad2(b3, 1, Dout_p, f32)

    # VMEM budget estimate (double-buffered x/out, resident weights,
    # f32 intermediates) with 2x headroom, capped.
    vmem_need = (
        2 * (TILE_B * Din_p * 2 + TILE_B * Dout_p * 4)            # x (bf16), out (f32)
        + 2 * 2 * (Din_p * H1_p + H1_p * H2_p + H2_p * Dout_p)    # bf16 weights
        + 2 * 4 * (H1_p + H2_p + Dout_p)                          # f32 biases
        + 4 * TILE_B * (H1_p + H2_p + Dout_p)                     # f32 intermediates
    )
    vmem_limit = int(min(100 * 1024 * 1024, max(32 * 1024 * 1024, 2 * vmem_need)))

    batch_spec = lambda d: pl.BlockSpec((TILE_B, d), lambda i: (i, 0))
    resident = lambda shape: pl.BlockSpec(shape, lambda i: (0, 0))

    out_p = pl.pallas_call(
        decoder_kernel,
        out_shape=jax.ShapeDtypeStruct((B_pad, Dout_p), jnp.float32),
        grid=(n_tiles,),
        in_specs=[
            batch_spec(Din_p),
            resident(w1_p.shape), resident(b1_p.shape),
            resident(w2_p.shape), resident(b2_p.shape),
            resident(w3_p.shape), resident(b3_p.shape),
        ],
        out_specs=batch_spec(Dout_p),
        compiler_params=pltpu.CompilerParams(
            dimension_semantics=("parallel",),
            vmem_limit_bytes=vmem_limit,
        ),
    )(x_p, w1_p, b1_p, w2_p, b2_p, w3_p, b3_p)

    return out_p[:B, :D_out]


def init_params(key, D_in, H1, H2, D_out):
    """Deterministic init mimicking torch.nn.Linear (uniform(-1/sqrt(fan_in),..)),
    but weights stored as [in, out] (transposed from PyTorch's [out, in])."""
    ks = jax.random.split(key, 6)

    def lin(kw, kb, fan_in, fan_out):
        bound = 1.0 / jnp.sqrt(fan_in)
        w = jax.random.uniform(kw, (fan_in, fan_out), jnp.float32, -bound, bound)
        b = jax.random.uniform(kb, (1, fan_out), jnp.float32, -bound, bound)
        return w, b

    w1, b1 = lin(ks[0], ks[1], D_in, H1)
    w2, b2 = lin(ks[2], ks[3], H1, H2)
    w3, b3 = lin(ks[4], ks[5], H2, D_out)
    return dict(w1=w1, b1=b1, w2=w2, b2=b2, w3=w3, b3=b3)


def decoder_ref(x, p):
    h = jnp.maximum(x @ p["w1"] + p["b1"], 0.0)
    h = jnp.maximum(h @ p["w2"] + p["b2"], 0.0)
    return jnp.maximum(h @ p["w3"] + p["b3"], 0.0)


if __name__ == "__main__":
    # Small shapes consistent with Decoder(D_in, H1, H2, D_out).
    # D_out deliberately non-128-aligned to exercise the padding path.
    B, D_in, H1, H2, D_out = 8, 16, 32, 64, 100

    key = jax.random.PRNGKey(0)
    k_x, k_p = jax.random.split(key)
    x = jax.random.normal(k_x, (B, D_in), jnp.float32)
    params = init_params(k_p, D_in, H1, H2, D_out)

    out = decoder_forward(x, params)
    out = jax.block_until_ready(out)

    ref = decoder_ref(x, params)
    assert out.shape == (B, D_out)
    # bf16 matmul inputs -> compare against f32 reference with bf16-level tolerance.
    assert jnp.allclose(out, ref, atol=2e-2, rtol=2e-2), "mismatch vs reference"

    print("KERNEL_OK")
</pallas_src>

<mosaic_0001>
module attributes {stable_mosaic.version = 11 : i64} {
  func.func @decoder_kernel(%arg0: i32, %arg1: memref<8x128xbf16, #tpu.memory_space<vmem>>, %arg2: memref<128x128xbf16, #tpu.memory_space<vmem>>, %arg3: memref<1x128xf32, #tpu.memory_space<vmem>>, %arg4: memref<128x128xbf16, #tpu.memory_space<vmem>>, %arg5: memref<1x128xf32, #tpu.memory_space<vmem>>, %arg6: memref<128x128xbf16, #tpu.memory_space<vmem>>, %arg7: memref<1x128xf32, #tpu.memory_space<vmem>>, %arg8: memref<8x128xf32, #tpu.memory_space<vmem>>) attributes {dimension_semantics = [#tpu.dimension_semantics<parallel>], iteration_bounds = array<i64: 1>, scalar_prefetch = 0 : i64, scratch_operands = 0 : i64, tpu.core_type = #tpu.core_type<tc>, window_params = [{transform_indices = @transform_0, window_bounds = array<i64: 8, 128>}, {pipeline_mode = #tpu.pipeline_mode<synchronous>, transform_indices = @transform_1, window_bounds = array<i64: 128, 128>}, {pipeline_mode = #tpu.pipeline_mode<synchronous>, transform_indices = @transform_2, window_bounds = array<i64: 1, 128>}, {pipeline_mode = #tpu.pipeline_mode<synchronous>, transform_indices = @transform_3, window_bounds = array<i64: 128, 128>}, {pipeline_mode = #tpu.pipeline_mode<synchronous>, transform_indices = @transform_4, window_bounds = array<i64: 1, 128>}, {pipeline_mode = #tpu.pipeline_mode<synchronous>, transform_indices = @transform_5, window_bounds = array<i64: 128, 128>}, {pipeline_mode = #tpu.pipeline_mode<synchronous>, transform_indices = @transform_6, window_bounds = array<i64: 1, 128>}, {transform_indices = @transform_7, window_bounds = array<i64: 8, 128>}]} {
    %c0 = arith.constant 0 : index
    %c0_0 = arith.constant 0 : index
    %0 = vector.load %arg1[%c0, %c0_0] : memref<8x128xbf16, #tpu.memory_space<vmem>>, vector<8x128xbf16>
    %c0_1 = arith.constant 0 : index
    %c0_2 = arith.constant 0 : index
    %1 = vector.load %arg2[%c0_1, %c0_2] : memref<128x128xbf16, #tpu.memory_space<vmem>>, vector<128x128xbf16>
    %cst = arith.constant dense<0.000000e+00> : vector<8x128xf32>
    %2 = tpu.matmul %0, %1, %cst {dimension_numbers = #tpu.dot_dimension_numbers<[1], [0], [0], [1], [0, 0, 1, 1], [], []>} : vector<8x128xbf16>, vector<128x128xbf16>, vector<8x128xf32> -> vector<8x128xf32>
    %c0_3 = arith.constant 0 : index
    %c0_4 = arith.constant 0 : index
    %3 = vector.load %arg3[%c0_3, %c0_4] : memref<1x128xf32, #tpu.memory_space<vmem>>, vector<1x128xf32>
    %4 = vector.broadcast %3 : vector<1x128xf32> to vector<8x128xf32>
    %5 = arith.addf %2, %4 : vector<8x128xf32>
    %cst_5 = arith.constant 0.000000e+00 : f32
    %6 = vector.broadcast %cst_5 : f32 to vector<8x128xf32>
    %7 = arith.maximumf %5, %6 : vector<8x128xf32>
    %8 = arith.truncf %7 : vector<8x128xf32> to vector<8x128xbf16>
    %c0_6 = arith.constant 0 : index
    %c0_7 = arith.constant 0 : index
    %9 = vector.load %arg4[%c0_6, %c0_7] : memref<128x128xbf16, #tpu.memory_space<vmem>>, vector<128x128xbf16>
    %cst_8 = arith.constant dense<0.000000e+00> : vector<8x128xf32>
    %10 = tpu.matmul %8, %9, %cst_8 {dimension_numbers = #tpu.dot_dimension_numbers<[1], [0], [0], [1], [0, 0, 1, 1], [], []>} : vector<8x128xbf16>, vector<128x128xbf16>, vector<8x128xf32> -> vector<8x128xf32>
    %c0_9 = arith.constant 0 : index
    %c0_10 = arith.constant 0 : index
    %11 = vector.load %arg5[%c0_9, %c0_10] : memref<1x128xf32, #tpu.memory_space<vmem>>, vector<1x128xf32>
    %12 = vector.broadcast %11 : vector<1x128xf32> to vector<8x128xf32>
    %13 = arith.addf %10, %12 : vector<8x128xf32>
    %cst_11 = arith.constant 0.000000e+00 : f32
    %14 = vector.broadcast %cst_11 : f32 to vector<8x128xf32>
    %15 = arith.maximumf %13, %14 : vector<8x128xf32>
    %16 = arith.truncf %15 : vector<8x128xf32> to vector<8x128xbf16>
    %c0_12 = arith.constant 0 : index
    %c0_13 = arith.constant 0 : index
    %17 = vector.load %arg6[%c0_12, %c0_13] : memref<128x128xbf16, #tpu.memory_space<vmem>>, vector<128x128xbf16>
    %cst_14 = arith.constant dense<0.000000e+00> : vector<8x128xf32>
    %18 = tpu.matmul %16, %17, %cst_14 {dimension_numbers = #tpu.dot_dimension_numbers<[1], [0], [0], [1], [0, 0, 1, 1], [], []>} : vector<8x128xbf16>, vector<128x128xbf16>, vector<8x128xf32> -> vector<8x128xf32>
    %c0_15 = arith.constant 0 : index
    %c0_16 = arith.constant 0 : index
    %19 = vector.load %arg7[%c0_15, %c0_16] : memref<1x128xf32, #tpu.memory_space<vmem>>, vector<1x128xf32>
    %20 = vector.broadcast %19 : vector<1x128xf32> to vector<8x128xf32>
    %21 = arith.addf %18, %20 : vector<8x128xf32>
    %cst_17 = arith.constant 0.000000e+00 : f32
    %22 = vector.broadcast %cst_17 : f32 to vector<8x128xf32>
    %23 = arith.maximumf %21, %22 : vector<8x128xf32>
    %c0_18 = arith.constant 0 : index
    %c0_19 = arith.constant 0 : index
    %24 = vector.load %arg8[%c0_18, %c0_19] : memref<8x128xf32, #tpu.memory_space<vmem>>, vector<8x128xf32>
    tpu.vector_store %arg8[%c0_18, %c0_19], %23 {strides = array<i32>} : memref<8x128xf32, #tpu.memory_space<vmem>>, vector<8x128xf32>,
    return
  }
  func.func @transform_0(%arg0: i32) -> (i32, i32) {
    %c0_i32 = arith.constant 0 : i32
    %c0_i32_0 = arith.constant 0 : i32
    return %arg0, %c0_i32 : i32, i32
  }
  func.func @transform_1(%arg0: i32) -> (i32, i32) {
    %c0_i32 = arith.constant 0 : i32
    %c0_i32_0 = arith.constant 0 : i32
    %c0_i32_1 = arith.constant 0 : i32
    return %c0_i32, %c0_i32_0 : i32, i32
  }
  func.func @transform_2(%arg0: i32) -> (i32, i32) {
    %c0_i32 = arith.constant 0 : i32
    %c0_i32_0 = arith.constant 0 : i32
    %c0_i32_1 = arith.constant 0 : i32
    return %c0_i32, %c0_i32_0 : i32, i32
  }
  func.func @transform_3(%arg0: i32) -> (i32, i32) {
    %c0_i32 = arith.constant 0 : i32
    %c0_i32_0 = arith.constant 0 : i32
    %c0_i32_1 = arith.constant 0 : i32
    return %c0_i32, %c0_i32_0 : i32, i32
  }
  func.func @transform_4(%arg0: i32) -> (i32, i32) {
    %c0_i32 = arith.constant 0 : i32
    %c0_i32_0 = arith.constant 0 : i32
    %c0_i32_1 = arith.constant 0 : i32
    return %c0_i32, %c0_i32_0 : i32, i32
  }
  func.func @transform_5(%arg0: i32) -> (i32, i32) {
    %c0_i32 = arith.constant 0 : i32
    %c0_i32_0 = arith.constant 0 : i32
    %c0_i32_1 = arith.constant 0 : i32
    return %c0_i32, %c0_i32_0 : i32, i32
  }
  func.func @transform_6(%arg0: i32) -> (i32, i32) {
    %c0_i32 = arith.constant 0 : i32
    %c0_i32_0 = arith.constant 0 : i32
    %c0_i32_1 = arith.constant 0 : i32
    return %c0_i32, %c0_i32_0 : i32, i32
  }
  func.func @transform_7(%arg0: i32) -> (i32, i32) {
    %c0_i32 = arith.constant 0 : i32
    %c0_i32_0 = arith.constant 0 : i32
    return %arg0, %c0_i32 : i32, i32
  }
}

</mosaic_0001>

<bundles_post_ra>
// kernel: decoder_forward.1
= control target key start
LH: loop header
LB: loop body
LE: loop exit
PB: predicated region body
PF: predicated region fallthrough
CT: control target
= control target key end

     0   :  { %v547_v1 = vmov 0.0   ;;  %vm548_vm0 = vmmov 0   ;;  %s716_s0 = inlined_call_operand.vmem [shape: bf16[8,128], index: 0, kind: input, shape index: {}]   ;;  %s717_s1 = inlined_call_operand.vmem [shape: bf16[128,128], index: 1, kind: input, shape index: {}]   ;;  %s718_s2 = inlined_call_operand.vmem [shape: f32[1,128], index: 2, kind: input, shape index: {}]   ;;  %s719_s3 = inlined_call_operand.vmem [shape: bf16[128,128], index: 3, kind: input, shape index: {}]   ;;  %s720_s4 = inlined_call_operand.vmem [shape: f32[1,128], index: 4, kind: input, shape index: {}]   ;;  %s721_s5 = inlined_call_operand.vmem [shape: bf16[128,128], index: 5, kind: input, shape index: {}]   ;;  %s722_s6 = inlined_call_operand.vmem [shape: f32[1,128], index: 6, kind: input, shape index: {}]   ;;  %s723_s7 = inlined_call_operand.hbm [shape: f32[8,128], index: 7, kind: output, shape index: {}]  }
   0x1   :  { %v499_v0 = vld [vmem:[%s717_s1] sm:$0xff]   ;;  %436 = vmatprep.subr.bf16.mxu0 %v547_v1  ;;  %456 = vmatprep.subr.bf16.mxu1 %v547_v1  ;;  %v500_v2 = vld [vmem:[%s717_s1 + $0x8] sm:$0xff]   ;;  %v501_v3 = vld [vmem:[%s717_s1 + $0x10] sm:$0xff]  }
   0x2   :  { %437 = vmatpush3.bf16.msra.mxu0 %v499_v0  ;;  %452 = vmatprep.mubr.msk.bf16.mxu0 %vm548_vm0, %v547_v1  ;;  %v507_v4 = vld [vmem:[%s719_s3] sm:$0xff]   ;;  %v502_v5 = vld [vmem:[%s717_s1 + $0x18] sm:$0xff]   ;;  %v508_v6 = vld [vmem:[%s719_s3 + $0x8] sm:$0xff]  }
   0x3   :  { %438 = vmatprep.subr.bf16.mxu0 %v547_v1  ;;  %472 = vmatprep.mubr.msk.bf16.mxu1 %vm548_vm0, %v547_v1  ;;  %v503_v7 = vld [vmem:[%s717_s1 + $0x20] sm:$0xff]   ;;  %v509_v8 = vld [vmem:[%s719_s3 + $0x10] sm:$0xff]   ;;  %v504_v9 = vld [vmem:[%s717_s1 + $0x28] sm:$0xff]  }
   0x4   :  { %457 = vmatpush3.bf16.msra.mxu1 %v507_v4  ;;  %v510_v10 = vld [vmem:[%s719_s3 + $0x18] sm:$0xff]  }
   0x5   :  { %458 = vmatprep.subr.bf16.mxu1 %v547_v1 }
   0x6   :  { %439 = vmatpush3.bf16.msra.mxu0 %v500_v2 }
   0x7   :  { %440 = vmatprep.subr.bf16.mxu0 %v547_v1 }
   0x8   :  { %459 = vmatpush3.bf16.msra.mxu1 %v508_v6 }
   0x9   :  { %460 = vmatprep.subr.bf16.mxu1 %v547_v1 }
   0xa   :  { %441 = vmatpush3.bf16.msra.mxu0 %v501_v3 }
   0xb   :  { %442 = vmatprep.subr.bf16.mxu0 %v547_v1 }
   0xc   :  { %461 = vmatpush3.bf16.msra.mxu1 %v509_v8 }
   0xd   :  { %462 = vmatprep.subr.bf16.mxu1 %v547_v1 }
   0xe   :  { %443 = vmatpush3.bf16.msra.mxu0 %v502_v5 }
   0xf   :  { %444 = vmatprep.subr.bf16.mxu0 %v547_v1 }
  0x12   :  { %445 = vmatpush3.bf16.msra.mxu0 %v503_v7 }
  0x13   :  { %446 = vmatprep.subr.bf16.mxu0 %v547_v1 }
  0x14   :  { %12 = vsyncpa [#allocation3], 0  ;;  %v505_v11 = vld [vmem:[%s717_s1 + $0x30] sm:$0xff]   ;;  %463 = vmatpush3.bf16.msra.mxu1 %v510_v10  ;;  %v511_v12 = vld [vmem:[%s719_s3 + $0x20] sm:$0xff]   ;;  %s549_s30 = smov [#allocation2]  }
  0x15   :  { %464 = vmatprep.subr.bf16.mxu1 %v547_v1  ;;  %v506_v13 = vld [vmem:[%s717_s1 + $0x38] sm:$0xff]   ;;  %v512_v14 = vld [vmem:[%s719_s3 + $0x28] sm:$0xff]   ;;  %v28_v15 = vld [vmem:[%s716_s0] sm:$0xf] }
  0x16   :  { %447 = vmatpush3.bf16.msra.mxu0 %v504_v9  ;;  %v513_v16 = vld [vmem:[%s719_s3 + $0x30] sm:$0xff]   ;;  %v514_v17 = vld [vmem:[%s719_s3 + $0x38] sm:$0xff]   ;;  %v515_v18 = vld [vmem:[%s721_s5] sm:$0xff]  }
  0x17   :  { %448 = vmatprep.subr.bf16.mxu0 %v547_v1  ;;  %v516_v19 = vld [vmem:[%s721_s5 + $0x8] sm:$0xff]   ;;  %v517_v20 = vld [vmem:[%s721_s5 + $0x10] sm:$0xff]   ;;  %v518_v21 = vld [vmem:[%s721_s5 + $0x18] sm:$0xff]  }
  0x18   :  { %465 = vmatpush3.bf16.msra.mxu1 %v511_v12  ;;  %v519_v22 = vld [vmem:[%s721_s5 + $0x20] sm:$0xff]   ;;  %v520_v23 = vld [vmem:[%s721_s5 + $0x28] sm:$0xff]   ;;  %v521_v32 = vld [vmem:[%s721_s5 + $0x30] sm:$0xff]  }
  0x19   :  { %466 = vmatprep.subr.bf16.mxu1 %v547_v1  ;;  %v382_v24 = vld [vmem:[%s718_s2] ss:$0 sm:$0xff]  ;;  %v522_v33 = vld [vmem:[%s721_s5 + $0x38] sm:$0xff]   ;;  %s374_s5 = sshll.u32 %s549_s30, 4  ;;  %s375_s5 = int_to_ptr.vmem [resolvable:$true] %s374_s5 }
  0x1a   :  { %449 = vmatpush3.bf16.msra.mxu0 %v505_v11  ;;  %v391_v34 = vld [vmem:[%s720_s4] ss:$0 sm:$0xff]  ;;  %s523_s4 = scalar_lea.vmem %s375_s5, 128  ;;  %p528_p1 = scmp.lt.s32.totalorder %s375_s5, %s375_s5 }
  0x1b   :  { %450 = vmatprep.subr.bf16.mxu0 %v547_v1  ;;  %v400_v42 = vld [vmem:[%s722_s6] ss:$0 sm:$0xff]  ;;  %p524_p0 = scmp.ne.s32.totalorder %s375_s5, %s523_s4  ;;  %p529_p2 = scmp.lt.s32.totalorder %s523_s4, %s523_s4 }
  0x1c   :  { %467 = vmatpush3.bf16.msra.mxu1 %v512_v14 }
  0x1d   :  { %468 = vmatprep.subr.bf16.mxu1 %v547_v1  ;;  %p530_p3 = por %p529_p2, %p528_p1 }
  0x1e   :  { %451 = vmatpush3.bf16.msra.mxu0 %v506_v13 }
  0x1f   :  { %476 = vmatprep.subr.bf16.mxu0 %v547_v1  ;;  %p531_p4 = pnand %p530_p3, %p524_p0 }
  0x20   :  { %469 = vmatpush3.bf16.msra.mxu1 %v513_v16 }
  0x21   :  { %453 = vmatmul.mubr.bf16.vlgmr.msra.gmra.mrb[0].mxu0 %v28_v15  ;;  %470 = vmatprep.subr.bf16.mxu1 %v547_v1 }
  0x22   :  { %492 = vmatprep.mubr.msk.bf16.mxu0 %vm548_vm0, %v547_v1  ;;  %477 = vmatpush3.bf16.msra.mxu0 %v515_v18 }
  0x23   :  { %478 = vmatprep.subr.bf16.mxu0 %v547_v1 }
  0x24   :  { %471 = vmatpush3.bf16.msra.mxu1 %v514_v17 }
  0x26   :  { %479 = vmatpush3.bf16.msra.mxu0 %v516_v19 }
  0x27   :  { %480 = vmatprep.subr.bf16.mxu0 %v547_v1 }
  0x2a   :  { %481 = vmatpush3.bf16.msra.mxu0 %v517_v20 }
  0x2b   :  { %482 = vmatprep.subr.bf16.mxu0 %v547_v1 }
  0x2e   :  { %483 = vmatpush3.bf16.msra.mxu0 %v518_v21 }
  0x2f   :  { %484 = vmatprep.subr.bf16.mxu0 %v547_v1 }
  0x32   :  { %485 = vmatpush3.bf16.msra.mxu0 %v519_v22 }
  0x33   :  { %486 = vmatprep.subr.bf16.mxu0 %v547_v1 }
  0x36   :  { %487 = vmatpush3.bf16.msra.mxu0 %v520_v23 }
  0x37   :  { %488 = vmatprep.subr.bf16.mxu0 %v547_v1 }
  0x3a   :  { %489 = vmatpush3.bf16.msra.mxu0 %v521_v32 }
  0x3b   :  { %490 = vmatprep.subr.bf16.mxu0 %v547_v1 }
  0x3e   :  { %491 = vmatpush3.bf16.msra.mxu0 %v522_v33 }
  0xf4   :  { %v134_v25 = vpop.f32.mrb[0].mxu0 }
  0xf5   :  { %v135_v26 = vadd.f32 %v382_v24, %v134_v25  ;;  %v454_v27 = vpop.f32.mrb[1].mxu0 }
  0xf6   :  { %v137_v28 = vpop.f32.mrb[2].mxu0 }
  0xf7   :  { %v140_v29 = vmax.f32 %v135_v26, 0.0  ;;  %v455_v30 = vpop.f32.mrb[3].mxu0 }
  0xf9   :  { %v141_v31 = vpack.c.bf16 %v140_v29, %v140_v29 }
  0xfb   :  { %473 = vmatmul.mubr.bf16.vlgmr.msra.gmra.mrb[0].mxu1 %v141_v31 }
 0x1ce   :  { %v247_v35 = vpop.f32.mrb[0].mxu1 }
 0x1cf   :  { %v248_v36 = vadd.f32 %v391_v34, %v247_v35  ;;  %v474_v37 = vpop.f32.mrb[1].mxu1 }
 0x1d0   :  { %v250_v38 = vpop.f32.mrb[2].mxu1 }
 0x1d1   :  { %v253_v39 = vmax.f32 %v248_v36, 0.0  ;;  %v475_v40 = vpop.f32.mrb[3].mxu1 }
 0x1d3   :  { %v254_v41 = vpack.c.bf16 %v253_v39, %v253_v39 }
 0x1d5   :  { %493 = vmatmul.mubr.bf16.vlgmr.msra.gmra.mrb[4].mxu0 %v254_v41 }
 0x2a8   :  { %v360_v43 = vpop.f32.mrb[4].mxu0 }
 0x2a9   :  { %v361_v44 = vadd.f32 %v400_v42, %v360_v43  ;;  %v494_v45 = vpop.f32.mrb[5].mxu0 }
 0x2aa   :  { %v363_v46 = vpop.f32.mrb[6].mxu0 }
 0x2ab   :  { %v366_v47 = vmax.f32 %v361_v44, 0.0  ;;  %v495_v48 = vpop.f32.mrb[7].mxu0 }
 0x2ad   :  { %367 = vst [vmem:[#allocation2] sm:$0xff] %v366_v47 }
 0x2ae   :  { %534 = shalt.err (!%p531_p4)
}
 0x2af   :  { %s535_s6 = scalar_lea.hbm %s723_s7, 128 }
 0x2b0   :  { %p536_p5 = scmp.ne.s32.totalorder %s723_s7, %s535_s6  ;;  %p539_p6 = scmp.lt.u32.totalorder %s535_s6, %s723_s7 }
 0x2b2   :  { %p541_p7 = pnand %p539_p6, %p536_p5 }
 0x2b4   :  { %544 = shalt.err (!%p541_p7)
}
 0x2b5   :  { %377 = dma.vmem_to_hbm [thread:$0]  %s375_s5, 128, %s723_s7, [#allocation3]  }
 0x2b6   :  { %545 = dma.done.wait [#allocation3], 128  }
 0x2b7   :  { %546 = vsyncadd [#allocation3], 4294967168 }
 0x2b8   :  { %381 = vsyncpa [#allocation3], 1 }

</bundles_post_ra>
